<compile_context>
chip_gen: v7x
topology: tpu7x:2x2x1
jax: 0.10.0
libtpu: 0.0.40
codegen_flags: <defaults>
</compile_context>

<pallas_src>
import functools

import jax
import jax.numpy as jnp
import numpy as np
from jax.experimental import pallas as pl
from jax.experimental.pallas import tpu as pltpu


def _qmix_kernel(n_agents, hidden_dim,
                 qs_ref,     # [A, TB]        f32  (agent Q values, batch on lanes)
                 st_ref,     # [TB, D]        f32  (state, natural row-major layout)
                 wcat_ref,   # [Ncat_pad, D]  bf16 (fused hypernet weights)
                 bcat_ref,   # [Ncat_pad, 1]  f32  (fused hypernet biases)
                 wb_ref,     # [H, 1]         f32  (hyper_b2 final linear W)
                 bb_ref,     # [1, 1]         f32  (hyper_b2 final linear b)
                 out_ref):   # [1, TB]        f32
    A, H = n_agents, hidden_dim

    # Batch-on-lanes state for the MXU: the transpose rides the XLU slot
    # (idle here — the kernel is VALU-bound), the cast is a cheap VPU convert.
    st_t = st_ref[...].T.astype(jnp.bfloat16)                   # [D, TB]

    # --- single fused hypernetwork matmul on the MXU ---
    # rows:  [0, A*H)         -> w1 (per-agent mixing weights)
    #        [A*H, A*H+H)     -> b1
    #        [A*H+H, A*H+2H)  -> w2
    #        [A*H+2H, A*H+3H) -> z  (hyper_b2 hidden layer)
    hyp = (jnp.dot(wcat_ref[...], st_t, preferred_element_type=jnp.float32)
           + bcat_ref[...])                                     # [Ncat_pad, TB] f32

    w1 = jnp.abs(hyp[:A * H, :])                                # [A*H, TB]
    b1 = hyp[A * H:A * H + H, :]                                # [H, TB]
    w2 = jnp.abs(hyp[A * H + H:A * H + 2 * H, :])               # [H, TB]
    z = hyp[A * H + 2 * H:A * H + 3 * H, :]                     # [H, TB]
    z = jnp.maximum(z, 0.01 * z)                                # LeakyReLU (slope 0.01)

    # --- per-sample mixing: h = ELU(q @ w1 + b1), batch stays on lanes ---
    qs = qs_ref[...]                                            # [A, TB] f32
    h = b1
    for a in range(A):
        h = h + qs[a:a + 1, :] * w1[a * H:(a + 1) * H, :]
    h = jnp.where(h > 0, h, jnp.exp(h) - 1.0)                   # ELU(alpha=1)

    # --- q_tot = sum_j h*w2 + (z @ wb + bb), one fused sublane reduction ---
    m = h * w2 + z * wb_ref[...]                                # [H, TB]
    q_row = jnp.sum(m, axis=0, keepdims=True) + bb_ref[...]     # [1, TB]
    out_ref[...] = q_row.astype(out_ref.dtype)


def _round_up(x, m):
    return -(-x // m) * m


def _choose_tile_b(B, max_tile=4096):
    """Clamp to the 128-rounded batch for small B; target ~4 grid steps
    (pipeline fill + v7x dual-TensorCore sharding), capped at max_tile."""
    b128 = _round_up(max(B, 1), 128)
    target = _round_up(max(-(-B // 4), 1), 128)
    return max(128, min(max_tile, target, b128))


def qmixer_forward(agent_qs, state, params, *, n_agents, input_dim, hidden_dim,
                   tile_b=None):
    """agent_qs: [..., n_agents, 1], state: [..., input_dim] -> [..., 1]."""
    batch_shape = agent_qs.shape[:-2]
    B = int(np.prod(batch_shape))
    assert agent_qs.shape[-2] == n_agents

    A, H, D = n_agents, hidden_dim, input_dim
    assert H % 8 == 0, "hidden_dim should be a multiple of 8 for clean sublane tiling"

    if tile_b is None:
        tile_b = _choose_tile_b(B)
    assert tile_b % 128 == 0

    qs = agent_qs.reshape(B, -1).astype(jnp.float32)    # [B, A]  (|A| == 1)
    st = state.reshape(B, -1).astype(jnp.float32)       # [B, D]
    assert qs.shape[-1] == A and st.shape[-1] == D

    # Pad the flattened batch to a tile multiple (padded lanes sliced off later).
    B_pad = _round_up(B, tile_b)
    if B_pad != B:
        qs = jnp.pad(qs, ((0, B_pad - B), (0, 0)))
        st = jnp.pad(st, ((0, B_pad - B), (0, 0)))

    # Only the tiny agent-Q array is transposed host-side (batch on lanes);
    # the (much larger) state goes in untransposed, transposed on-chip.
    qs_t = qs.T                                          # [A, B_pad] f32

    # Fuse the four hypernet Linears into one weight / bias (out-features rows).
    n_cat = A * H + 3 * H
    n_pad = _round_up(n_cat, 16)                         # bf16 sublane packing
    w_cat = jnp.concatenate(
        [params["ww1"], params["wb1"], params["ww2"], params["wa"]], axis=1)   # [D, n_cat]
    b_cat = jnp.concatenate(
        [params["bw1"], params["bb1"], params["bw2"], params["ba"]], axis=1)   # [1, n_cat]
    if n_pad != n_cat:
        w_cat = jnp.pad(w_cat, ((0, 0), (0, n_pad - n_cat)))
        b_cat = jnp.pad(b_cat, ((0, 0), (0, n_pad - n_cat)))
    w_cat_t = w_cat.T.astype(jnp.bfloat16)               # [n_pad, D]
    b_cat_t = b_cat.T.astype(jnp.float32)                # [n_pad, 1]
    wb_col = params["wb"].astype(jnp.float32)            # [H, 1]
    bb = params["bb"].astype(jnp.float32)                # [1, 1]

    kernel = functools.partial(_qmix_kernel, A, H)

    out = pl.pallas_call(
        kernel,
        out_shape=jax.ShapeDtypeStruct((1, B_pad), jnp.float32),
        grid=(B_pad // tile_b,),
        in_specs=[
            pl.BlockSpec((A, tile_b), lambda i: (0, i)),        # agent Qs (batch on lanes)
            pl.BlockSpec((tile_b, D), lambda i: (i, 0)),        # state (natural layout)
            pl.BlockSpec((n_pad, D), lambda i: (0, 0)),         # fused hypernet W
            pl.BlockSpec((n_pad, 1), lambda i: (0, 0)),         # fused hypernet b
            pl.BlockSpec((H, 1), lambda i: (0, 0)),             # hyper_b2[2] weight
            pl.BlockSpec((1, 1), lambda i: (0, 0)),             # hyper_b2[2] bias
        ],
        out_specs=pl.BlockSpec((1, tile_b), lambda i: (0, i)),  # lane-dense output row
        compiler_params=pltpu.CompilerParams(
            dimension_semantics=("parallel",),
            vmem_limit_bytes=32 * 1024 * 1024),
    )(qs_t, st, w_cat_t, b_cat_t, wb_col, bb)

    return out[0, :B].reshape(*batch_shape, 1)


def qmixer_reference(agent_qs, state, params, *, n_agents, hidden_dim,
                     matmul_dtype=jnp.bfloat16):
    """Pure-JAX reference mirroring the PyTorch forward (hypernet matmul
    operands rounded to bf16 to match the kernel's MXU precision)."""
    batch_shape = agent_qs.shape[:-2]
    B = int(np.prod(batch_shape))
    qs = agent_qs.reshape(B, 1, -1).astype(jnp.float32)
    st = state.reshape(B, -1).astype(jnp.float32)
    stm = st.astype(matmul_dtype).astype(jnp.float32)

    def hyp(wk, bk):
        w = params[wk].astype(matmul_dtype).astype(jnp.float32)
        return stm @ w + params[bk]

    w1 = jnp.abs(hyp("ww1", "bw1")).reshape(B, n_agents, hidden_dim)
    b1 = hyp("wb1", "bb1")[:, None, :]
    w2 = jnp.abs(hyp("ww2", "bw2"))[:, :, None]
    z = hyp("wa", "ba")
    z = jnp.where(z > 0, z, 0.01 * z)
    b2 = (z @ params["wb"] + params["bb"])[:, None, :]
    h = jax.nn.elu(jnp.einsum("bij,bjk->bik", qs, w1) + b1)
    q_tot = jnp.einsum("bij,bjk->bik", h, w2) + b2
    return q_tot.reshape(*batch_shape, 1)


def init_params(key, n_agents, input_dim, hidden_dim):
    """Deterministic synthetic parameters (shapes match the nn.Linear layers,
    stored as [in_features, out_features])."""
    ks = jax.random.split(key, 10)

    def lin(kw, kb, fan_in, fan_out):
        scale = 1.0 / np.sqrt(fan_in)
        w = jax.random.uniform(kw, (fan_in, fan_out), jnp.float32, -scale, scale)
        b = jax.random.uniform(kb, (1, fan_out), jnp.float32, -scale, scale)
        return w, b

    ww1, bw1 = lin(ks[0], ks[1], input_dim, n_agents * hidden_dim)   # hyper_w1
    wb1, bb1 = lin(ks[2], ks[3], input_dim, hidden_dim)              # hyper_b1
    ww2, bw2 = lin(ks[4], ks[5], input_dim, hidden_dim)              # hyper_w2
    wa, ba = lin(ks[6], ks[7], input_dim, hidden_dim)                # hyper_b2[0]
    wb, bb = lin(ks[8], ks[9], hidden_dim, 1)                        # hyper_b2[2]
    return dict(ww1=ww1, bw1=bw1, wb1=wb1, bb1=bb1, ww2=ww2, bw2=bw2,
                wa=wa, ba=ba, wb=wb, bb=bb)


if __name__ == "__main__":
    # Small shapes consistent with the module: N=2 envs, L=8 steps,
    # n_agents=4, |A|=1, state/input_dim=32, hidden_dim=32.
    N, L = 2, 8
    n_agents, input_dim, hidden_dim = 4, 32, 32

    key = jax.random.PRNGKey(0)
    k_p, k_q, k_s = jax.random.split(key, 3)
    params = init_params(k_p, n_agents, input_dim, hidden_dim)
    agent_qs = jax.random.normal(k_q, (N, L, n_agents, 1), jnp.float32)
    state = jax.random.normal(k_s, (N, L, input_dim), jnp.float32)

    q_tot = qmixer_forward(agent_qs, state, params,
                           n_agents=n_agents, input_dim=input_dim,
                           hidden_dim=hidden_dim)
    q_tot = jax.block_until_ready(q_tot)

    q_ref = qmixer_reference(agent_qs, state, params,
                             n_agents=n_agents, hidden_dim=hidden_dim)
    np.testing.assert_allclose(np.asarray(q_tot), np.asarray(q_ref),
                               rtol=1e-3, atol=1e-3)
    assert q_tot.shape == (N, L, 1)
    print("KERNEL_OK")
</pallas_src>

<mosaic_0001>
module attributes {stable_mosaic.version = 11 : i64} {
  func.func @_qmix_kernel(%arg0: i32, %arg1: memref<4x128xf32, #tpu.memory_space<vmem>>, %arg2: memref<128x32xf32, #tpu.memory_space<vmem>>, %arg3: memref<224x32xbf16, #tpu.memory_space<vmem>>, %arg4: memref<224x1xf32, #tpu.memory_space<vmem>>, %arg5: memref<32x1xf32, #tpu.memory_space<vmem>>, %arg6: memref<1x1xf32, #tpu.memory_space<vmem>>, %arg7: memref<1x128xf32, #tpu.memory_space<vmem>>) attributes {dimension_semantics = [#tpu.dimension_semantics<parallel>], iteration_bounds = array<i64: 1>, scalar_prefetch = 0 : i64, scratch_operands = 0 : i64, tpu.core_type = #tpu.core_type<tc>, window_params = [{transform_indices = @transform_0, window_bounds = array<i64: 4, 128>}, {transform_indices = @transform_1, window_bounds = array<i64: 128, 32>}, {pipeline_mode = #tpu.pipeline_mode<synchronous>, transform_indices = @transform_2, window_bounds = array<i64: 224, 32>}, {pipeline_mode = #tpu.pipeline_mode<synchronous>, transform_indices = @transform_3, window_bounds = array<i64: 224, 1>}, {pipeline_mode = #tpu.pipeline_mode<synchronous>, transform_indices = @transform_4, window_bounds = array<i64: 32, 1>}, {pipeline_mode = #tpu.pipeline_mode<synchronous>, transform_indices = @transform_5, window_bounds = array<i64: 1, 1>}, {transform_indices = @transform_6, window_bounds = array<i64: 1, 128>}]} {
    %c0 = arith.constant 0 : index
    %c0_0 = arith.constant 0 : index
    %0 = vector.load %arg2[%c0, %c0_0] : memref<128x32xf32, #tpu.memory_space<vmem>>, vector<128x32xf32>
    %1 = tpu.transpose %0, [1, 0] : vector<128x32xf32> -> vector<32x128xf32>
    %2 = arith.truncf %1 : vector<32x128xf32> to vector<32x128xbf16>
    %c0_1 = arith.constant 0 : index
    %c0_2 = arith.constant 0 : index
    %3 = vector.load %arg3[%c0_1, %c0_2] : memref<224x32xbf16, #tpu.memory_space<vmem>>, vector<224x32xbf16>
    %cst = arith.constant dense<0.000000e+00> : vector<224x128xf32>
    %4 = tpu.matmul %3, %2, %cst {dimension_numbers = #tpu.dot_dimension_numbers<[1], [0], [0], [1], [0, 0, 1, 1], [], []>} : vector<224x32xbf16>, vector<32x128xbf16>, vector<224x128xf32> -> vector<224x128xf32>
    %c0_3 = arith.constant 0 : index
    %c0_4 = arith.constant 0 : index
    %5 = vector.load %arg4[%c0_3, %c0_4] : memref<224x1xf32, #tpu.memory_space<vmem>>, vector<224x1xf32>
    %6 = vector.broadcast %5 : vector<224x1xf32> to vector<224x128xf32>
    %7 = arith.addf %4, %6 : vector<224x128xf32>
    %8 = vector.extract_strided_slice %7 {offsets = [0, 0], sizes = [128, 128], strides = [1, 1]} : vector<224x128xf32> to vector<128x128xf32>
    %9 = math.absf %8 : vector<128x128xf32>
    %10 = vector.extract_strided_slice %7 {offsets = [128, 0], sizes = [32, 128], strides = [1, 1]} : vector<224x128xf32> to vector<32x128xf32>
    %11 = vector.extract_strided_slice %7 {offsets = [160, 0], sizes = [32, 128], strides = [1, 1]} : vector<224x128xf32> to vector<32x128xf32>
    %12 = math.absf %11 : vector<32x128xf32>
    %13 = vector.extract_strided_slice %7 {offsets = [192, 0], sizes = [32, 128], strides = [1, 1]} : vector<224x128xf32> to vector<32x128xf32>
    %cst_5 = arith.constant 0.00999999977 : f32
    %14 = vector.broadcast %cst_5 : f32 to vector<32x128xf32>
    %15 = arith.mulf %14, %13 : vector<32x128xf32>
    %16 = arith.maximumf %13, %15 : vector<32x128xf32>
    %c0_6 = arith.constant 0 : index
    %c0_7 = arith.constant 0 : index
    %17 = vector.load %arg1[%c0_6, %c0_7] : memref<4x128xf32, #tpu.memory_space<vmem>>, vector<4x128xf32>
    %18 = vector.extract_strided_slice %17 {offsets = [0, 0], sizes = [1, 128], strides = [1, 1]} : vector<4x128xf32> to vector<1x128xf32>
    %19 = vector.extract_strided_slice %9 {offsets = [0, 0], sizes = [32, 128], strides = [1, 1]} : vector<128x128xf32> to vector<32x128xf32>
    %20 = vector.broadcast %18 : vector<1x128xf32> to vector<32x128xf32>
    %21 = arith.mulf %20, %19 : vector<32x128xf32>
    %22 = arith.addf %10, %21 : vector<32x128xf32>
    %23 = vector.extract_strided_slice %17 {offsets = [1, 0], sizes = [1, 128], strides = [1, 1]} : vector<4x128xf32> to vector<1x128xf32>
    %24 = vector.extract_strided_slice %9 {offsets = [32, 0], sizes = [32, 128], strides = [1, 1]} : vector<128x128xf32> to vector<32x128xf32>
    %25 = vector.broadcast %23 : vector<1x128xf32> to vector<32x128xf32>
    %26 = arith.mulf %25, %24 : vector<32x128xf32>
    %27 = arith.addf %22, %26 : vector<32x128xf32>
    %28 = vector.extract_strided_slice %17 {offsets = [2, 0], sizes = [1, 128], strides = [1, 1]} : vector<4x128xf32> to vector<1x128xf32>
    %29 = vector.extract_strided_slice %9 {offsets = [64, 0], sizes = [32, 128], strides = [1, 1]} : vector<128x128xf32> to vector<32x128xf32>
    %30 = vector.broadcast %28 : vector<1x128xf32> to vector<32x128xf32>
    %31 = arith.mulf %30, %29 : vector<32x128xf32>
    %32 = arith.addf %27, %31 : vector<32x128xf32>
    %33 = vector.extract_strided_slice %17 {offsets = [3, 0], sizes = [1, 128], strides = [1, 1]} : vector<4x128xf32> to vector<1x128xf32>
    %34 = vector.extract_strided_slice %9 {offsets = [96, 0], sizes = [32, 128], strides = [1, 1]} : vector<128x128xf32> to vector<32x128xf32>
    %35 = vector.broadcast %33 : vector<1x128xf32> to vector<32x128xf32>
    %36 = arith.mulf %35, %34 : vector<32x128xf32>
    %37 = arith.addf %32, %36 : vector<32x128xf32>
    %cst_8 = arith.constant 0.000000e+00 : f32
    %38 = vector.broadcast %cst_8 : f32 to vector<32x128xf32>
    %39 = arith.cmpf ogt, %37, %38 : vector<32x128xf32>
    %40 = math.exp %37 : vector<32x128xf32>
    %cst_9 = arith.constant 1.000000e+00 : f32
    %41 = vector.broadcast %cst_9 : f32 to vector<32x128xf32>
    %42 = arith.subf %40, %41 : vector<32x128xf32>
    %43 = arith.select %39, %37, %42 : vector<32x128xi1>, vector<32x128xf32>
    %44 = arith.mulf %43, %12 : vector<32x128xf32>
    %c0_10 = arith.constant 0 : index
    %c0_11 = arith.constant 0 : index
    %45 = vector.load %arg5[%c0_10, %c0_11] : memref<32x1xf32, #tpu.memory_space<vmem>>, vector<32x1xf32>
    %46 = vector.broadcast %45 : vector<32x1xf32> to vector<32x128xf32>
    %47 = arith.mulf %16, %46 : vector<32x128xf32>
    %48 = arith.addf %44, %47 : vector<32x128xf32>
    %cst_12 = arith.constant dense<0.000000e+00> : vector<128xf32>
    %49 = vector.multi_reduction <add>, %48, %cst_12 [0] : vector<32x128xf32> to vector<128xf32>
    %50 = vector.shape_cast %49 : vector<128xf32> to vector<1x128xf32>
    %c0_13 = arith.constant 0 : index
    %c0_14 = arith.constant 0 : index
    %51 = vector.load %arg6[%c0_13, %c0_14] : memref<1x1xf32, #tpu.memory_space<vmem>>, vector<1x1xf32>
    %52 = vector.broadcast %51 : vector<1x1xf32> to vector<1x128xf32>
    %53 = arith.addf %50, %52 : vector<1x128xf32>
    %c0_15 = arith.constant 0 : index
    %c0_16 = arith.constant 0 : index
    %54 = vector.load %arg7[%c0_15, %c0_16] : memref<1x128xf32, #tpu.memory_space<vmem>>, vector<1x128xf32>
    tpu.vector_store %arg7[%c0_15, %c0_16], %53 {strides = array<i32>} : memref<1x128xf32, #tpu.memory_space<vmem>>, vector<1x128xf32>,
    return
  }
  func.func @transform_0(%arg0: i32) -> (i32, i32) {
    %c0_i32 = arith.constant 0 : i32
    %c0_i32_0 = arith.constant 0 : i32
    return %c0_i32, %arg0 : i32, i32
  }
  func.func @transform_1(%arg0: i32) -> (i32, i32) {
    %c0_i32 = arith.constant 0 : i32
    %c0_i32_0 = arith.constant 0 : i32
    return %arg0, %c0_i32 : i32, i32
  }
  func.func @transform_2(%arg0: i32) -> (i32, i32) {
    %c0_i32 = arith.constant 0 : i32
    %c0_i32_0 = arith.constant 0 : i32
    %c0_i32_1 = arith.constant 0 : i32
    return %c0_i32, %c0_i32_0 : i32, i32
  }
  func.func @transform_3(%arg0: i32) -> (i32, i32) {
    %c0_i32 = arith.constant 0 : i32
    %c0_i32_0 = arith.constant 0 : i32
    %c0_i32_1 = arith.constant 0 : i32
    return %c0_i32, %c0_i32_0 : i32, i32
  }
  func.func @transform_4(%arg0: i32) -> (i32, i32) {
    %c0_i32 = arith.constant 0 : i32
    %c0_i32_0 = arith.constant 0 : i32
    %c0_i32_1 = arith.constant 0 : i32
    return %c0_i32, %c0_i32_0 : i32, i32
  }
  func.func @transform_5(%arg0: i32) -> (i32, i32) {
    %c0_i32 = arith.constant 0 : i32
    %c0_i32_0 = arith.constant 0 : i32
    %c0_i32_1 = arith.constant 0 : i32
    return %c0_i32, %c0_i32_0 : i32, i32
  }
  func.func @transform_6(%arg0: i32) -> (i32, i32) {
    %c0_i32 = arith.constant 0 : i32
    %c0_i32_0 = arith.constant 0 : i32
    return %c0_i32, %arg0 : i32, i32
  }
}

</mosaic_0001>

<bundles_post_ra>
// kernel: tpu_custom_call.1
= control target key start
LH: loop header
LB: loop body
LE: loop exit
PB: predicated region body
PF: predicated region fallthrough
CT: control target
= control target key end

     0   :  { %s1154_s0 = inlined_call_operand.vmem [shape: f32[4,128], index: 0, kind: input, shape index: {}]   ;;  %s1155_s1 = inlined_call_operand.vmem [shape: f32[128,32], index: 1, kind: input, shape index: {}]   ;;  %s1156_s2 = inlined_call_operand.vmem [shape: bf16[224,32], index: 2, kind: input, shape index: {}]   ;;  %s1157_s3 = inlined_call_operand.vmem [shape: f32[224,1], index: 3, kind: input, shape index: {}]   ;;  %s1158_s4 = inlined_call_operand.vmem [shape: f32[32,1], index: 4, kind: input, shape index: {}]   ;;  %s1159_s5 = inlined_call_operand.<no memory space> [shape: f32[1,1], index: 5, kind: input, shape index: {}]   ;;  %s1160_s6 = inlined_call_operand.hbm [shape: f32[1,128], index: 6, kind: output, shape index: {}]  }
   0x1   :  { %v11_v0 = vstv %s1159_s5 }
   0x2   :  { %12 = vst [vmem:[#allocation2] sm:$0x1] %v11_v0 }
   0x3   :  { %v27_v1 = vld [vmem:[%s1155_s1] sm:$0xff]  ;;  %v833_v2 = vmov 0   ;;  %v28_v3 = vld [vmem:[%s1155_s1 + $0x8] sm:$0xff]  ;;  %v29_v5 = vld [vmem:[%s1155_s1 + $0x10] sm:$0xff]  ;;  %vm343_vm0 = vcmask 261120  }
   0x4   :  { %43 = vxpose.xlu0.b32.start [1/16] (narrow) %v27_v1, 32  ;;  %785 = vset.pattern.permute.xlu1 %v833_v2  ;;  %v105_v4 = vld [vmem:[%s1157_s3] sm:$0xff]  ;;  %v106_v6 = vld [vmem:[%s1157_s3 + $0x8] sm:$0xff]  ;;  %v30_v7 = vld [vmem:[%s1155_s1 + $0x18] sm:$0xff] }
   0x5   :  { %135 = vperm.xlu1 %785, %v105_v4   ;;  %v107_v8 = vld [vmem:[%s1157_s3 + $0x10] sm:$0xff]  ;;  %v31_v9 = vld [vmem:[%s1155_s1 + $0x20] sm:$0xff]  ;;  %v108_v10 = vld [vmem:[%s1157_s3 + $0x18] sm:$0xff] }
   0x6   :  { %v787_v11 = vld [vmem:[%s1156_s2] sm:$0xff]   ;;  %v32_v13 = vld [vmem:[%s1155_s1 + $0x28] sm:$0xff]  ;;  %v33_v15 = vld [vmem:[%s1155_s1 + $0x30] sm:$0xff] }
   0x7   :  { %v788_v12 = vld [vmem:[%s1156_s2 + $0x40] sm:$0xff]   ;;  %751 = vmatprep.mubr.msk.bf16.mxu0 %vm343_vm0, %v787_v11  ;;  %v110_v16 = vld [vmem:[%s1157_s3 + $0x28] sm:$0xff] }
   0x8   :  { %44 = vxpose.xlu0.b32.cont [2/16] (narrow) %v28_v3, 32  ;;  %v109_v14 = vld [vmem:[%s1157_s3 + $0x20] sm:$0xff]  ;;  %767 = vmatprep.mubr.msk.bf16.mxu1 %vm343_vm0, %v788_v12 }
   0x9   :  { %140 = vperm.xlu1 %785, %v106_v6  }
   0xc   :  { %45 = vxpose.xlu0.b32.cont [3/16] (narrow) %v29_v5, 32 }
   0xd   :  { %145 = vperm.xlu1 %785, %v107_v8  }
  0x10   :  { %46 = vxpose.xlu0.b32.cont [4/16] (narrow) %v30_v7, 32 }
  0x11   :  { %150 = vperm.xlu1 %785, %v108_v10  }
  0x14   :  { %47 = vxpose.xlu0.b32.cont [5/16] (narrow) %v31_v9, 32 }
  0x15   :  { %155 = vperm.xlu1 %785, %v109_v14  }
  0x18   :  { %48 = vxpose.xlu0.b32.cont [6/16] (narrow) %v32_v13, 32 }
  0x1c   :  { %49 = vxpose.xlu0.b32.cont [7/16] (narrow) %v33_v15, 32 }
  0x1d   :  { %13 = vsyncpa [#allocation4], 0  ;;  %v34_v17 = vld [vmem:[%s1155_s1 + $0x38] sm:$0xff]  ;;  %160 = vperm.xlu1 %785, %v110_v16   ;;  %v111_v18 = vld [vmem:[%s1157_s3 + $0x30] sm:$0xff] }
  0x1e   :  { %v35_v19 = vld [vmem:[%s1155_s1 + $0x40] sm:$0xff]  ;;  %v36_v21 = vld [vmem:[%s1155_s1 + $0x48] sm:$0xff]  ;;  %v37_v23 = vld [vmem:[%s1155_s1 + $0x50] sm:$0xff] }
  0x1f   :  { %v113_v20 = vld [vmem:[%s1157_s3 + $0x40] sm:$0xff]  ;;  %v114_v22 = vld [vmem:[%s1157_s3 + $0x48] sm:$0xff]  ;;  %v38_v25 = vld [vmem:[%s1155_s1 + $0x58] sm:$0xff] }
  0x20   :  { %50 = vxpose.xlu0.b32.cont [8/16] (narrow) %v34_v17, 32  ;;  %v121_v24 = vld [vmem:[%s1157_s3 + $0x80] sm:$0xff]  ;;  %v122_v26 = vld [vmem:[%s1157_s3 + $0x88] sm:$0xff]  ;;  %v112_v28 = vld [vmem:[%s1157_s3 + $0x38] sm:$0xff] }
  0x21   :  { %165 = vperm.xlu1 %785, %v111_v18   ;;  %v39_v27 = vld [vmem:[%s1155_s1 + $0x60] sm:$0xff]  ;;  %v40_v29 = vld [vmem:[%s1155_s1 + $0x68] sm:$0xff]  ;;  %v115_v30 = vld [vmem:[%s1157_s3 + $0x50] sm:$0xff] }
  0x22   :  { %v41_v31 = vld [vmem:[%s1155_s1 + $0x70] sm:$0xff]  ;;  %v117_v32 = vld [vmem:[%s1157_s3 + $0x60] sm:$0xff]  ;;  %v42_v33 = vld [vmem:[%s1155_s1 + $0x78] sm:$0xff] }
  0x23   :  { %v118_v34 = vld [vmem:[%s1157_s3 + $0x68] sm:$0xff]  ;;  %v123_v35 = vld [vmem:[%s1157_s3 + $0x90] sm:$0xff]  ;;  %v124_v37 = vld [vmem:[%s1157_s3 + $0x98] sm:$0xff] }
  0x24   :  { %51 = vxpose.xlu0.b32.cont [9/16] (narrow) %v35_v19, 32  ;;  %v119_v36 = vld [vmem:[%s1157_s3 + $0x70] sm:$0xff]  ;;  %v120_v38 = vld [vmem:[%s1157_s3 + $0x78] sm:$0xff]  ;;  %v129_v39 = vld [vmem:[%s1157_s3 + $0xc0] sm:$0xff] }
  0x25   :  { %175 = vperm.xlu1 %785, %v113_v20   ;;  %v130_v40 = vld [vmem:[%s1157_s3 + $0xc8] sm:$0xff]  ;;  %v125_v41 = vld [vmem:[%s1157_s3 + $0xa0] sm:$0xff]  ;;  %v131_v43 = vld [vmem:[%s1157_s3 + $0xd0] sm:$0xff] }
  0x26   :  { %v126_v42 = vld [vmem:[%s1157_s3 + $0xa8] sm:$0xff]  ;;  %v127_v44 = vld [vmem:[%s1157_s3 + $0xb0] sm:$0xff]  ;;  %v116_v45 = vld [vmem:[%s1157_s3 + $0x58] sm:$0xff] }
  0x27   :  { %v132_v46 = vld [vmem:[%s1157_s3 + $0xd8] sm:$0xff]  ;;  %v632_v47 = vld [vmem:[%s1158_s4] sm:$0xff]  ;;  %v634_v49 = vld [vmem:[%s1158_s4 + $0x10] sm:$0xff] }
  0x28   :  { %52 = vxpose.xlu0.b32.cont [10/16] (narrow) %v36_v21, 32  ;;  %v128_v48 = vld [vmem:[%s1157_s3 + $0xb8] sm:$0xff]  ;;  %v633_v50 = vld [vmem:[%s1158_s4 + $0x8] sm:$0xff]  ;;  %v673_v51 = vld [vmem:[#allocation2] sm:$0x1] }
  0x29   :  { %180 = vperm.xlu1 %785, %v114_v22   ;;  %v635_v52 = vld [vmem:[%s1158_s4 + $0x18] sm:$0xff]  ;;  %v789_v59 = vld [vmem:[%s1156_s2 + $0x8] sm:$0xff]   ;;  %v791_v61 = vld [vmem:[%s1156_s2 + $0x10] sm:$0xff]  }
  0x2a   :  { %v790_v60 = vld [vmem:[%s1156_s2 + $0x48] sm:$0xff]   ;;  %v792_v62 = vld [vmem:[%s1156_s2 + $0x50] sm:$0xff]   ;;  %v793_v63 = vld [vmem:[%s1156_s2 + $0x18] sm:$0xff]  }
  0x2b   :  { %v794_v0 = vld [vmem:[%s1156_s2 + $0x58] sm:$0xff]   ;;  %v795_v1 = vld [vmem:[%s1156_s2 + $0x20] sm:$0xff]   ;;  %v797_v3 = vld [vmem:[%s1156_s2 + $0x28] sm:$0xff]  }
  0x2c   :  { %53 = vxpose.xlu0.b32.cont [11/16] (narrow) %v37_v23, 32  ;;  %v798_v4 = vld [vmem:[%s1156_s2 + $0x68] sm:$0xff]   ;;  %v799_v5 = vld [vmem:[%s1156_s2 + $0x30] sm:$0xff]   ;;  %v800_v6 = vld [vmem:[%s1156_s2 + $0x38] sm:$0xff]  }
  0x2d   :  { %215 = vperm.xlu1 %785, %v121_v24  }
  0x30   :  { %54 = vxpose.xlu0.b32.cont [12/16] (narrow) %v38_v25, 32 }
  0x31   :  { %220 = vperm.xlu1 %785, %v122_v26   ;;  %v560_v26 = vlaneseq }
  0x34   :  { %55 = vxpose.xlu0.b32.cont [13/16] (narrow) %v39_v27, 32 }
  0x35   :  { %170 = vperm.xlu1 %785, %v112_v28   ;;  %v1093_v28 = vshrl.u32 %v560_v26, 7 }
  0x37   :  { %v586_v26 = vsub.s32 2, %v1093_v28 }
  0x38   :  { %56 = vxpose.xlu0.b32.cont [14/16] (narrow) %v40_v29, 32  ;;  %v562_v29 = vsub.s32 0, %v1093_v28 }
  0x39   :  { %185 = vperm.xlu1 %785, %v115_v30   ;;  %v1099_v30 = vld [vmem:[%s1154_s0] sm:$0xf]  ;;  %s834_s0 = smov [#allocation3]  }
  0x3a   :  { %s691_s19 = sshll.u32 %s834_s0, 4  ;;  %s692_s19 = int_to_ptr.vmem [resolvable:$true] %s691_s19 }
  0x3b   :  { %s809_s1 = scalar_lea.vmem %s692_s19, 16  ;;  %s813_s20 = scalar_lea.vmem %s692_s19, 32 }
  0x3c   :  { %57 = vxpose.xlu0.b32.cont [15/16] (narrow) %v41_v31, 32  ;;  %p810_p0 = scmp.ne.s32.totalorder %s692_s19, %s809_s1  ;;  %p814_p1 = scmp.lt.s32.totalorder %s692_s19, %s692_s19 }
  0x3d   :  { %195 = vperm.xlu1 %785, %v117_v32   ;;  %p815_p2 = scmp.lt.s32.totalorder %s813_s20, %s809_s1 }
  0x3f   :  { %p816_p3 = por %p815_p2, %p814_p1 }
  0x40   :  { %58 = vxpose.xlu0.b32.end [16/16] (narrow) %v42_v33, 32 }
  0x41   :  { %200 = vperm.xlu1 %785, %v118_v34   ;;  %p817_p4 = pnand %p816_p3, %p810_p0 }
  0x45   :  { %225 = vperm.xlu1 %785, %v123_v35   ;;  %v563_v35 = vrot.slane %v1099_v30, %v562_v29 }
  0x49   :  { %205 = vperm.xlu1 %785, %v119_v36  }
  0x4d   :  { %230 = vperm.xlu1 %785, %v124_v37  }
  0x51   :  { %210 = vperm.xlu1 %785, %v120_v38  }
  0x55   :  { %255 = vperm.xlu1 %785, %v129_v39  }
  0x59   :  { %260 = vperm.xlu1 %785, %v130_v40  }
  0x5d   :  { %235 = vperm.xlu1 %785, %v125_v41  }
  0x61   :  { %240 = vperm.xlu1 %785, %v126_v42  }
  0x65   :  { %265 = vperm.xlu1 %785, %v131_v43  }
  0x69   :  { %245 = vperm.xlu1 %785, %v127_v44   ;;  %786 = vset.pattern.permute.xlu0 %v833_v2  ;;  %v796_v2 = vld [vmem:[%s1156_s2 + $0x60] sm:$0xff]  }
  0x6a   :  { %190 = vperm.xlu0 %786, %v116_v45  }
  0x6d   :  { %270 = vperm.xlu1 %785, %v132_v46  }
  0x6e   :  { %638 = vperm.xlu0 %786, %v632_v47  }
  0x71   :  { %250 = vperm.xlu1 %785, %v128_v48  }
  0x72   :  { %648 = vperm.xlu0 %786, %v634_v49  }
  0x75   :  { %643 = vperm.xlu1 %785, %v633_v50   ;;  %v574_v50 = vsub.s32 1, %v1093_v28 }
  0x76   :  { %676 = vperm.xlu0 %786, %v673_v51  }
  0x79   :  { %653 = vperm.xlu1 %785, %v635_v52  }
  0x84   :  { %v59_v53 = vpop.trf.xlu0  ;;  %v136_v7 = vpop.permute.xlu1 %135 }
  0x88   :  { %v60_v54 = vpop.trf.xlu0  ;;  %v141_v8 = vpop.permute.xlu1 %140 }
  0x89   :  { %v75_v55 = vpack.c.bf16 %v60_v54, %v59_v53 }
  0x8b   :  { %747 = vmatprep.subr.bf16.mxu0 %v75_v55  ;;  %779 = vmatprep.subr.bf16.mxu1 %v75_v55 }
  0x8c   :  { %748 = vmatpush3.bf16.msra.mxu0 %v75_v55  ;;  %781 = vmatpush3.bf16.msra.mxu1 %v75_v55  ;;  %v61_v56 = vpop.trf.xlu0  ;;  %v146_v9 = vpop.permute.xlu1 %145 }
  0x90   :  { %v62_v57 = vpop.trf.xlu0  ;;  %v151_v10 = vpop.permute.xlu1 %150 }
  0x91   :  { %v76_v58 = vpack.c.bf16 %v62_v57, %v61_v56 }
  0x93   :  { %749 = vmatprep.subr.bf16.mxu0 %v76_v58  ;;  %780 = vmatprep.subr.bf16.mxu1 %v76_v58 }
  0x94   :  { %750 = vmatpush3.bf16.msra.mxu0 %v76_v58  ;;  %782 = vmatpush3.bf16.msra.mxu1 %v76_v58  ;;  %v156_v11 = vpop.permute.xlu1 %155 }
  0x97   :  { %752 = vmatmul.mubr.msk.bf16.vlgmr.msra.gmra.mrb[0].mxu0 %vm343_vm0, %v789_v59  ;;  %768 = vmatmul.mubr.msk.bf16.vlgmr.msra.gmra.mrb[0].mxu1 %vm343_vm0, %v790_v60 }
  0x98   :  { %755 = vmatprep.mubr.msk.bf16.mxu0 %vm343_vm0, %v791_v61  ;;  %771 = vmatprep.mubr.msk.bf16.mxu1 %vm343_vm0, %v792_v62 }
  0x9c   :  { %v1075_v12 = vpop.permute.xlu1 %160 }
  0x9f   :  { %756 = vmatmul.mubr.msk.bf16.gmra.mrb[4].mxu0 %vm343_vm0, %v793_v63  ;;  %772 = vmatmul.mubr.msk.bf16.gmra.mrb[4].mxu1 %vm343_vm0, %v794_v0 }
  0xa0   :  { %759 = vmatprep.mubr.msk.bf16.mxu0 %vm343_vm0, %v795_v1  ;;  %775 = vmatprep.mubr.msk.bf16.mxu1 %vm343_vm0, %v796_v2  ;;  %v166_v13 = vpop.permute.xlu1 %165  ;;  %v575_v1 = vrot.slane %v1099_v30, %v574_v50 }
  0xa4   :  { %v1077_v14 = vpop.permute.xlu1 %175 }
  0xa7   :  { %760 = vmatmul.mubr.msk.bf16.gmra.mrb[8].mxu0 %vm343_vm0, %v797_v3  ;;  %776 = vmatmul.mubr.msk.bf16.gmra.mrb[8].mxu1 %vm343_vm0, %v798_v4 }
  0xa8   :  { %763 = vmatprep.mubr.msk.bf16.mxu0 %vm343_vm0, %v799_v5  ;;  %v1079_v15 = vpop.permute.xlu1 %180 }
  0xac   :  { %v216_v16 = vpop.permute.xlu1 %215 }
  0xaf   :  { %764 = vmatmul.mubr.msk.bf16.gmra.mrb[12].mxu0 %vm343_vm0, %v800_v6 }
  0xb0   :  { %v221_v17 = vpop.permute.xlu1 %220 }
  0xb4   :  { %v171_v18 = vpop.permute.xlu1 %170 }
  0xb8   :  { %v1081_v19 = vpop.permute.xlu1 %185 }
  0xbc   :  { %v1083_v20 = vpop.permute.xlu1 %195 }
  0xc0   :  { %v1085_v21 = vpop.permute.xlu1 %200 }
  0xc4   :  { %v226_v22 = vpop.permute.xlu1 %225 }
  0xc8   :  { %v1087_v23 = vpop.permute.xlu1 %205 }
  0xcc   :  { %v231_v24 = vpop.permute.xlu1 %230 }
  0xd0   :  { %v1089_v25 = vpop.permute.xlu1 %210 }
  0xd4   :  { %v1091_v27 = vpop.permute.xlu1 %255 }
  0xd8   :  { %v1101_v31 = vpop.permute.xlu1 %260 }
  0xdc   :  { %v1107_v54 = vpop.permute.xlu1 %235 }
 0x16a   :  { %v753_v32 = vpop.f32.mrb[0].mxu0  ;;  %v769_v33 = vpop.f32.mrb[0].mxu1 }
 0x16b   :  { %v429_v34 = vadd.f32 %v753_v32, %v146_v9  ;;  %v420_v36 = vpop.f32.mrb[1].mxu0  ;;  %v484_v37 = vpop.f32.mrb[1].mxu1  ;;  %v493_v47 = vadd.f32 %v769_v33, %v226_v22 }
 0x16c   :  { %v421_v38 = vadd.f32 %v420_v36, %v136_v7  ;;  %v754_v39 = vpop.f32.mrb[2].mxu0  ;;  %v770_v40 = vpop.f32.mrb[2].mxu1  ;;  %v485_v52 = vadd.f32 %v484_v37, %v216_v16 }
 0x16d   :  { %v533_v41 = vand.u32 2147483647, %v429_v34  ;;  %v432_v42 = vadd.f32 %v754_v39, %v151_v10  ;;  %v423_v43 = vpop.f32.mrb[3].mxu0  ;;  %v487_v44 = vpop.f32.mrb[3].mxu1  ;;  %v496_v57 = vadd.f32 %v770_v40, %v231_v24 }
 0x16e   :  { %v531_v45 = vand.u32 2147483647, %v421_v38  ;;  %v424_v46 = vadd.f32 %v423_v43, %v141_v8  ;;  %v488_v60 = vadd.f32 %v487_v44, %v221_v17  ;;  %v1120_v32 = vpop.permute.xlu1 %240  ;;  %v191_v36 = vpop.permute.xlu0 %190 }
 0x16f   :  { %v566_v48 = vmul.f32 %v563_v35, %v533_v41  ;;  %v534_v49 = vand.u32 2147483647, %v432_v42 }
 0x170   :  { %v564_v51 = vmul.f32 %v563_v35, %v531_v45  ;;  %v532_v53 = vand.u32 2147483647, %v424_v46 }
 0x171   :  { %v570_v55 = vadd.f32 %v566_v48, %v493_v47  ;;  %v567_v56 = vmul.f32 %v563_v35, %v534_v49 }
 0x172   :  { %v568_v58 = vadd.f32 %v564_v51, %v485_v52  ;;  %v565_v59 = vmul.f32 %v563_v35, %v532_v53  ;;  %v757_v61 = vpop.f32.mrb[4].mxu0  ;;  %v1109_v62 = vpop.f32.mrb[4].mxu1 }
 0x173   :  { %v571_v63 = vadd.f32 %v567_v56, %v496_v57  ;;  %v445_v0 = vadd.f32 %v757_v61, %v166_v13  ;;  %v436_v2 = vpop.f32.mrb[5].mxu0  ;;  %v1112_v3 = vpop.f32.mrb[5].mxu1 }
 0x174   :  { %v569_v4 = vadd.f32 %v565_v59, %v488_v60  ;;  %v437_v5 = vadd.f32 %v436_v2, %v156_v11  ;;  %v758_v6 = vpop.f32.mrb[6].mxu0  ;;  %v1114_v7 = vpop.f32.mrb[6].mxu1 }
 0x175   :  { %v537_v8 = vand.u32 2147483647, %v445_v0  ;;  %v448_v9 = vadd.f32 %v758_v6, %v171_v18  ;;  %v439_v10 = vpop.f32.mrb[7].mxu0  ;;  %v1116_v16 = vpop.f32.mrb[7].mxu1 }
 0x176   :  { %v535_v17 = vand.u32 2147483647, %v437_v5  ;;  %v440_v22 = vadd.f32 %v439_v10, %v1075_v12  ;;  %v587_v12 = vrot.slane %v1099_v30, %v586_v26  ;;  %v266_v52 = vpop.permute.xlu1 %265 }
 0x177   :  { %v578_v24 = vmul.f32 %v575_v1, %v537_v8  ;;  %v538_v13 = vand.u32 2147483647, %v448_v9 }
 0x178   :  { %v576_v33 = vmul.f32 %v575_v1, %v535_v17  ;;  %v536_v34 = vand.u32 2147483647, %v440_v22 }
 0x179   :  { %v582_v11 = vadd.f32 %v578_v24, %v570_v55  ;;  %v579_v35 = vmul.f32 %v575_v1, %v538_v13 }
 0x17a   :  { %v580_v37 = vadd.f32 %v576_v33, %v568_v58  ;;  %v577_v38 = vmul.f32 %v575_v1, %v536_v34  ;;  %v761_v18 = vpop.f32.mrb[8].mxu0  ;;  %v777_v39 = vpop.f32.mrb[8].mxu1 }
 0x17b   :  { %v583_v40 = vadd.f32 %v579_v35, %v571_v63  ;;  %v461_v41 = vadd.f32 %v761_v18, %v1081_v19  ;;  %v452_v42 = vpop.f32.mrb[9].mxu0  ;;  %v516_v43 = vpop.f32.mrb[9].mxu1  ;;  %v598_v19 = vsub.s32 3, %v1093_v28 }
 0x17c   :  { %v581_v44 = vadd.f32 %v577_v38, %v569_v4  ;;  %v453_v45 = vadd.f32 %v452_v42, %v1077_v14  ;;  %v762_v46 = vpop.f32.mrb[10].mxu0  ;;  %v778_v47 = vpop.f32.mrb[10].mxu1  ;;  %v517_v42 = vadd.f32 %v516_v43, %v1091_v27 }
 0x17d   :  { %v541_v48 = vand.u32 2147483647, %v461_v41  ;;  %v464_v49 = vadd.f32 %v762_v46, %v191_v36  ;;  %v455_v50 = vpop.f32.mrb[11].mxu0  ;;  %v519_v51 = vpop.f32.mrb[11].mxu1  ;;  %v599_v4 = vrot.slane %v1099_v30, %v598_v19  ;;  %v525_v41 = vadd.f32 %v777_v39, %v266_v52 }
 0x17e   :  { %v539_v53 = vand.u32 2147483647, %v453_v45  ;;  %v456_v55 = vadd.f32 %v455_v50, %v1079_v15  ;;  %v246_v6 = vpop.permute.xlu1 %245  ;;  %v501_v50 = vadd.f32 %v1112_v3, %v1107_v54  ;;  %v504_v52 = vadd.f32 %v1116_v16, %v1120_v32 }
 0x17f   :  { %v590_v56 = vmul.f32 %v587_v12, %v541_v48  ;;  %v542_v57 = vand.u32 2147483647, %v464_v49  ;;  %v553_v45 = vmul.f32 0.01, %v525_v41  ;;  %v520_v48 = vadd.f32 %v519_v51, %v1101_v31 }
 0x180   :  { %v588_v58 = vmul.f32 %v587_v12, %v539_v53  ;;  %v540_v59 = vand.u32 2147483647, %v456_v55  ;;  %v509_v49 = vadd.f32 %v1109_v62, %v246_v6  ;;  %v551_v53 = vmul.f32 0.01, %v517_v42 }
 0x181   :  { %v594_v60 = vadd.f32 %v590_v56, %v582_v11  ;;  %v591_v61 = vmul.f32 %v587_v12, %v542_v57  ;;  %v557_v56 = vmax.f32 %v525_v41, %v553_v45  ;;  %v552_v43 = vmul.f32 0.01, %v520_v48 }
 0x182   :  { %v592_v63 = vadd.f32 %v588_v58, %v580_v37  ;;  %v589_v14 = vmul.f32 %v587_v12, %v540_v59  ;;  %v765_v0 = vpop.f32.mrb[12].mxu0  ;;  %v271_v30 = vpop.permute.xlu1 %270  ;;  %v547_v58 = vand.u32 2147483647, %v501_v50  ;;  %v548_v62 = vand.u32 2147483647, %v504_v52 }
 0x183   :  { %v595_v1 = vadd.f32 %v591_v61, %v583_v40  ;;  %v477_v2 = vadd.f32 %v765_v0, %v1087_v23  ;;  %v468_v5 = vpop.f32.mrb[13].mxu0  ;;  %v528_v46 = vadd.f32 %v778_v47, %v271_v30  ;;  %v549_v47 = vand.u32 2147483647, %v509_v49 }
 0x184   :  { %v593_v8 = vadd.f32 %v589_v14, %v581_v44  ;;  %v469_v15 = vadd.f32 %v468_v5, %v1083_v20  ;;  %v766_v9 = vpop.f32.mrb[14].mxu0  ;;  %v639_v44 = vpop.permute.xlu0 %638  ;;  %v555_v59 = vmax.f32 %v517_v42, %v551_v53  ;;  %v556_v32 = vmax.f32 %v520_v48, %v552_v43 }
 0x185   :  { %v545_v10 = vand.u32 2147483647, %v477_v2  ;;  %v480_v17 = vadd.f32 %v766_v9, %v1089_v25  ;;  %v471_v22 = vpop.f32.mrb[15].mxu0  ;;  %v554_v55 = vmul.f32 0.01, %v528_v46 }
 0x186   :  { %v543_v24 = vand.u32 2147483647, %v469_v15  ;;  %v472_v13 = vadd.f32 %v471_v22, %v1085_v21  ;;  %v251_v21 = vpop.permute.xlu1 %250  ;;  %v656_v5 = vmul.f32 %v639_v44, %v555_v59 }
 0x187   :  { %v602_v26 = vmul.f32 %v599_v4, %v545_v10  ;;  %v546_v33 = vand.u32 2147483647, %v480_v17  ;;  %v512_v39 = vadd.f32 %v1114_v7, %v251_v21  ;;  %v558_v3 = vmax.f32 %v528_v46, %v554_v55 }
 0x188   :  { %v600_v34 = vmul.f32 %v599_v4, %v543_v24  ;;  %v544_v11 = vand.u32 2147483647, %v472_v13  ;;  %v649_v57 = vpop.permute.xlu0 %648 }
 0x189   :  { %v606_v23 = vadd.f32 %v602_v26, %v594_v60  ;;  %v603_v35 = vmul.f32 %v599_v4, %v546_v33  ;;  %v550_v51 = vand.u32 2147483647, %v512_v39  ;;  %v658_v7 = vmul.f32 %v649_v57, %v557_v56 }
 0x18a   :  { %v604_v36 = vadd.f32 %v600_v34, %v592_v63  ;;  %v601_v37 = vmul.f32 %v599_v4, %v544_v11  ;;  %v644_v27 = vpop.permute.xlu1 %643 }
 0x18b   :  { %v616_v38 = vmul.f32 1.442695, %v606_v23  ;;  %v607_v18 = vadd.f32 %v603_v35, %v595_v1  ;;  %vm610_vm1 = vcmp.gt.f32.partialorder %v606_v23, 0.0  ;;  %v657_v22 = vmul.f32 %v644_v27, %v556_v32 }
 0x18c   :  { %v612_v20 = vmul.f32 1.442695, %v604_v36  ;;  %v605_v40 = vadd.f32 %v601_v37, %v593_v8  ;;  %vm608_vm2 = vcmp.gt.f32.partialorder %v604_v36, 0.0 }
 0x18d   :  { %801 = vpow2.f32 %v616_v38  ;;  %v618_v25 = vmul.f32 1.442695, %v607_v18  ;;  %vm611_vm3 = vcmp.gt.f32.partialorder %v607_v18, 0.0  ;;  %v677_v38 = vpop.permute.xlu0 %676 }
 0x18e   :  { %803 = vpow2.f32 %v612_v20  ;;  %v614_v12 = vmul.f32 1.442695, %v605_v40  ;;  %v654_v4 = vpop.permute.xlu1 %653  ;;  %vm609_vm4 = vcmp.gt.f32.partialorder %v605_v40, 0.0 }
 0x18f   :  { %805 = vpow2.f32 %v618_v25  ;;  %v659_v15 = vmul.f32 %v654_v4, %v558_v3 }
 0x190   :  { %807 = vpow2.f32 %v614_v12 }
 0x197   :  { %v802_v19 = vpop.eup %801 }
 0x198   :  { %v804_v31 = vpop.eup %803  ;;  %v729_v60 = vadd.f32 -1.0, %v802_v19 }
 0x199   :  { %v806_v54 = vpop.eup %805  ;;  %v727_v61 = vadd.f32 -1.0, %v804_v31 }
 0x19a   :  { %v808_v16 = vpop.eup %807  ;;  %v626_v63 = vsel %vm610_vm1, %v606_v23, %v729_v60  ;;  %v730_v14 = vadd.f32 -1.0, %v806_v54 }
 0x19b   :  { %v630_v0 = vmul.f32 %v626_v63, %v549_v47  ;;  %v624_v1 = vsel %vm608_vm2, %v604_v36, %v727_v61  ;;  %v728_v2 = vadd.f32 -1.0, %v808_v16 }
 0x19c   :  { %v628_v6 = vmul.f32 %v624_v1, %v547_v58  ;;  %v627_v8 = vsel %vm611_vm3, %v607_v18, %v730_v14  ;;  %v682_v18 = vrot.slane %v677_v38, %v562_v29 }
 0x19d   :  { %v662_v9 = vadd.f32 %v658_v7, %v630_v0  ;;  %v631_v10 = vmul.f32 %v627_v8, %v550_v51  ;;  %v625_v17 = vsel %vm609_vm4, %v605_v40, %v728_v2 }
 0x19e   :  { %v660_v24 = vadd.f32 %v656_v5, %v628_v6  ;;  %v629_v13 = vmul.f32 %v625_v17, %v548_v62 }
 0x19f   :  { %v663_v26 = vadd.f32 %v659_v15, %v631_v10 }
 0x1a0   :  { %v661_v33 = vadd.f32 %v657_v22, %v629_v13 }
 0x1a2   :  { %v664_v34 = vadd.f32 %v661_v33, %v660_v24 }
 0x1a4   :  { %v665_v11 = vadd.f32 %v664_v34, %v662_v9 }
 0x1a6   :  { %v666_v23 = vadd.f32 %v665_v11, %v663_v26 }
 0x1a8   :  { %v667_v35 = vrot.slane %v666_v23, 4 }
 0x1aa   :  { %v668_v30 = vadd.f32 %v667_v35, %v666_v23 }
 0x1ac   :  { %v669_v36 = vrot.slane %v668_v30, 2 }
 0x1ae   :  { %v670_v37 = vadd.f32 %v669_v36, %v668_v30 }
 0x1b0   :  { %v671_v20 = vrot.slane %v670_v37, 1 }
 0x1b2   :  { %v672_v40 = vadd.f32 %v671_v20, %v670_v37 }
 0x1b4   :  { %v683_v41 = vadd.f32 %v682_v18, %v672_v40 }
 0x1b6   :  { %684 = vst [vmem:[#allocation3] sm:$0x1] %v683_v41 }
 0x1b7   :  { %820 = shalt.err (!%p817_p4)
}
 0x1b8   :  { %s821_s22 = scalar_lea.hbm %s1160_s6, 16 }
 0x1b9   :  { %p822_p5 = scmp.ne.s32.totalorder %s1160_s6, %s821_s22  ;;  %p825_p6 = scmp.lt.u32.totalorder %s821_s22, %s1160_s6 }
 0x1bb   :  { %p827_p7 = pnand %p825_p6, %p822_p5 }
 0x1bd   :  { %830 = shalt.err (!%p827_p7)
}
 0x1be   :  { %694 = dma.vmem_to_hbm [thread:$0]  %s692_s19, 16, %s1160_s6, [#allocation4]  }
 0x1bf   :  { %831 = dma.done.wait [#allocation4], 16  }
 0x1c0   :  { %832 = vsyncadd [#allocation4], 4294967280 }
 0x1c1   :  { %698 = vsyncpa [#allocation4], 1 }

</bundles_post_ra>
